<compile_context>
chip_gen: v5e
topology: v5e:2x2
jax: 0.10.0
libtpu: 0.0.40
codegen_flags: <defaults>
</compile_context>

<pallas_src>
import jax
import jax.numpy as jnp
from jax.experimental import pallas as pl
from jax.experimental.pallas import tpu as pltpu

MAX_NEIGHBORS = 3
_LANE = 128
_SUBLANE = 8


def _round_up(v, m):
    return ((v + m - 1) // m) * m


def _vmem_capacity_bytes():
    try:
        return int(pltpu.get_tpu_info().vmem_capacity_bytes)
    except Exception:
        return 64 * 1024 * 1024  # assume the smallest (v7x) when unknown


def _auto_b_tile(batch, num_classes, tp, x_itemsize, vmem_limit):
    """Largest 8-multiple batch tile whose blocks + temporaries fit the budget."""
    # double-buffered x block + double-buffered int8 mask block
    # + ~10 live (b_tile, Tp) f32 temporaries (softmax + shift-and-add state)
    per_row = tp * (2 * num_classes * x_itemsize + 2 * 1 + 10 * 4)
    budget = int(vmem_limit * 0.75)
    bt = (budget // per_row) // _SUBLANE * _SUBLANE
    bt = min(bt, 256)                          # diminishing returns past ~256 rows
    bt = min(bt, _round_up(batch, _SUBLANE))   # never exceed the (padded) batch
    if batch > _SUBLANE:                       # keep G >= 2 -> both v7x TensorCores
        bt = min(bt, _round_up(-(-batch // 2), _SUBLANE))
    return max(_SUBLANE, bt)


def _isolated_frame_loss_kernel(x_ref, m_ref, loss_ref, msum_ref):
    # x_ref: (C, Bt, Tp) input dtype; m_ref: (Bt, Tp) int8 (1 = valid frame).
    num_classes = x_ref.shape[0]
    tp = x_ref.shape[2]
    m = m_ref[...].astype(jnp.float32)

    # --- streamed softmax over classes: only xmax / denom (plus the row being
    # re-read from VMEM) stay live, instead of 2*C (Bt,Tp) f32 temporaries.
    # The max pass is kept for numerical safety with large logit spreads.
    xmax = x_ref[0].astype(jnp.float32)
    for c in range(1, num_classes):
        xmax = jnp.maximum(xmax, x_ref[c].astype(jnp.float32))
    denom = jnp.zeros_like(xmax)
    for c in range(num_classes):
        denom = denom + jnp.exp(x_ref[c].astype(jnp.float32) - xmax)
    # class-1 probability, masked_fill(~mask, 0); exact divide here (precision-
    # sensitive) -- the approx reciprocal is reserved for the count division.
    p = jnp.exp(x_ref[1].astype(jnp.float32) - xmax) / denom * m

    # --- zero-padded neighbor shifts along T (the 128-lane axis).  The wrapper
    # guarantees >= MAX_NEIGHBORS trailing zero lanes (p == 0, m == 0 there),
    # so plain lane rotations reproduce conv1d's zero padding:
    #   roll(v, s)      -> v[t-s]; wrapped lanes (t < s) read trailing zeros
    #   roll(v, Tp - s) -> v[t+s]; wrapped lanes (t >= Tp-s) land on padding
    #                     lanes where mask == 0, so they never contribute.
    tgt = jnp.zeros_like(p)      # running neighbor-sum of p   (radius n+1)
    cnt = jnp.zeros_like(p)      # running neighbor-count
    abs_acc = jnp.zeros_like(p)  # sum over n of |p - target/count| * mask
    for n in range(MAX_NEIGHBORS):                  # static unroll
        s = n + 1
        tgt = tgt + pltpu.roll(p, shift=s, axis=1) + pltpu.roll(p, shift=tp - s, axis=1)
        cnt = cnt + pltpu.roll(m, shift=s, axis=1) + pltpu.roll(m, shift=tp - s, axis=1)
        # PyTorch only divides at selected (valid) frames; keep unselected lanes
        # finite so the 0-weighting below cannot produce NaN.  A valid frame
        # whose whole +-s neighborhood is masked keeps cnt == 0 -> inf, which
        # matches the reference module.
        cnt_safe = jnp.where(m > 0.0, cnt, 1.0)
        abs_acc = abs_acc + jnp.abs(p - tgt * pl.reciprocal(cnt_safe, approx=True)) * m

    loss_tile = jnp.sum(abs_acc, keepdims=True)     # (1, 1) partial |diff| sum
    msum_tile = jnp.sum(m, keepdims=True)           # (1, 1) valid-frame count

    # Lane-dense (8,128) output slab per tile; wrapper reads [:, 0, 0].
    loss_ref[...] = jnp.broadcast_to(loss_tile[None], (1, 8, 128))
    msum_ref[...] = jnp.broadcast_to(msum_tile[None], (1, 8, 128))


def isolated_frame_loss(x, mask=None, *, b_tile=None, x_layout="btc"):
    """IsolatedFrameLoss forward.

    x: (B, T, C) logits (f32/bf16) with x_layout="btc" (module layout), or
       (C, B, T) with x_layout="cbt" (skips the wrapper transpose copy).
    mask: optional (B, T) bool; None means all frames are valid.
    Returns a scalar f32 loss.  (All-false mask -> NaN, matching the PyTorch
    module where L1Loss is taken over an empty selection.)
    """
    if x_layout == "btc":
        B, T, C = x.shape
        x_cbt = jnp.transpose(x, (2, 0, 1))          # (C, B, T)
    elif x_layout == "cbt":
        C, B, T = x.shape
        x_cbt = x
    else:
        raise ValueError(f"unknown x_layout: {x_layout!r}")
    assert C >= 2, "need at least 2 classes (class index 1 is selected)"

    if mask is None:
        mask_i8 = jnp.ones((B, T), dtype=jnp.int8)
    else:
        mask_i8 = mask.astype(jnp.int8)

    # Pad T to a lane multiple with >= MAX_NEIGHBORS guaranteed zero lanes
    # (required by the roll-based shifts) and B to the batch tile.
    Tp = _round_up(T + MAX_NEIGHBORS, _LANE)
    vmem_limit = max(32 * 1024 * 1024, int(_vmem_capacity_bytes() * 0.6))
    if b_tile is None:
        b_tile = _auto_b_tile(B, C, Tp, jnp.dtype(x.dtype).itemsize, vmem_limit)
    assert b_tile % _SUBLANE == 0, "batch tile must be a multiple of 8 (sublanes)"
    Bp = _round_up(B, b_tile)
    G = Bp // b_tile

    if x_cbt.shape != (C, Bp, Tp):
        x_cbt = jnp.pad(x_cbt, ((0, 0), (0, Bp - B), (0, Tp - T)))
    if mask_i8.shape != (Bp, Tp):
        mask_i8 = jnp.pad(mask_i8, ((0, Bp - B), (0, Tp - T)))

    loss_parts, msum_parts = pl.pallas_call(
        _isolated_frame_loss_kernel,
        out_shape=(jax.ShapeDtypeStruct((G, 8, 128), jnp.float32),
                   jax.ShapeDtypeStruct((G, 8, 128), jnp.float32)),
        grid_spec=pltpu.PrefetchScalarGridSpec(
            num_scalar_prefetch=0,
            grid=(G,),
            in_specs=[pl.BlockSpec((C, b_tile, Tp), lambda i: (0, i, 0)),
                      pl.BlockSpec((b_tile, Tp), lambda i: (i, 0))],
            out_specs=(pl.BlockSpec((1, 8, 128), lambda i: (i, 0, 0)),
                       pl.BlockSpec((1, 8, 128), lambda i: (i, 0, 0))),
        ),
        compiler_params=pltpu.CompilerParams(
            dimension_semantics=("parallel",),
            vmem_limit_bytes=vmem_limit,
        ),
    )(x_cbt, mask_i8)

    n_selected = jnp.float32(MAX_NEIGHBORS) * jnp.sum(msum_parts[:, 0, 0])
    return jnp.sum(loss_parts[:, 0, 0]) / n_selected


def reference_loss(x, mask):
    """Pure-JAX mirror of the PyTorch module (for correctness check)."""
    mf = mask.astype(jnp.float32)
    p = jax.nn.softmax(x.astype(jnp.float32), axis=-1)[..., 1] * mf
    T = x.shape[1]
    idx = jnp.arange(T)
    dist = jnp.abs(idx[:, None] - idx[None, :])
    total = jnp.float32(0.0)
    for n in range(MAX_NEIGHBORS):
        band = ((dist >= 1) & (dist <= n + 1)).astype(jnp.float32)
        target = p @ band
        count = mf @ band
        count_safe = jnp.where(mf > 0, count, 1.0)
        total = total + jnp.sum(jnp.abs(p - target / count_safe) * mf)
    return total / (MAX_NEIGHBORS * jnp.sum(mf))


if __name__ == "__main__":
    key = jax.random.PRNGKey(0)
    B, T, C = 2, 16, 4
    x = jax.random.normal(key, (B, T, C), dtype=jnp.float32)

    # Partial mask: first two frames of every sequence are invalid.
    mask = jnp.ones((B, T), dtype=bool).at[:, :2].set(False)

    # f32 input, partial mask (tolerance covers the approx EUP reciprocal).
    loss_masked = isolated_frame_loss(x, mask)
    jax.block_until_ready(loss_masked)
    ref_masked = reference_loss(x, mask)
    assert jnp.allclose(loss_masked, ref_masked, rtol=1e-3, atol=1e-3), (
        loss_masked, ref_masked)

    # Default path (mask=None -> all frames valid).
    loss_full = isolated_frame_loss(x)
    jax.block_until_ready(loss_full)
    ref_full = reference_loss(x, jnp.ones((B, T), dtype=bool))
    assert jnp.allclose(loss_full, ref_full, rtol=1e-3, atol=1e-3), (
        loss_full, ref_full)

    # Producer-side (C, B, T) layout path: avoids the wrapper transpose copy.
    loss_cbt = isolated_frame_loss(jnp.transpose(x, (2, 0, 1)), mask, x_layout="cbt")
    jax.block_until_ready(loss_cbt)
    assert jnp.allclose(loss_cbt, loss_masked, rtol=1e-6, atol=1e-6), (
        loss_cbt, loss_masked)

    # bf16 input path (halves x's HBM/VMEM traffic; math stays f32 in-kernel).
    loss_bf16 = isolated_frame_loss(x.astype(jnp.bfloat16), mask)
    jax.block_until_ready(loss_bf16)
    assert bool(jnp.isfinite(loss_bf16))
    assert jnp.allclose(loss_bf16, ref_masked, rtol=5e-2, atol=5e-2), (
        loss_bf16, ref_masked)

    print("KERNEL_OK")
</pallas_src>

<mosaic_0001>
module attributes {stable_mosaic.version = 11 : i64} {
  func.func @_isolated_frame_loss_kernel(%arg0: i32, %arg1: memref<4x8x128xf32, #tpu.memory_space<vmem>>, %arg2: memref<8x128xi8, #tpu.memory_space<vmem>>, %arg3: memref<1x8x128xf32, #tpu.memory_space<vmem>>, %arg4: memref<1x8x128xf32, #tpu.memory_space<vmem>>) attributes {dimension_semantics = [#tpu.dimension_semantics<parallel>], iteration_bounds = array<i64: 1>, scalar_prefetch = 0 : i64, scratch_operands = 0 : i64, tpu.core_type = #tpu.core_type<tc>, window_params = [{transform_indices = @transform_0, window_bounds = array<i64: 4, 8, 128>}, {transform_indices = @transform_1, window_bounds = array<i64: 8, 128>}, {transform_indices = @transform_2, window_bounds = array<i64: 1, 8, 128>}, {transform_indices = @transform_3, window_bounds = array<i64: 1, 8, 128>}]} {
    %c0 = arith.constant 0 : index
    %c0_0 = arith.constant 0 : index
    %0 = vector.load %arg2[%c0, %c0_0] : memref<8x128xi8, #tpu.memory_space<vmem>>, vector<8x128xi8>
    %1 = arith.sitofp %0 : vector<8x128xi8> to vector<8x128xf32>
    %c0_1 = arith.constant 0 : index
    %c0_2 = arith.constant 0 : index
    %c0_3 = arith.constant 0 : index
    %2 = vector.load %arg1[%c0_1, %c0_2, %c0_3] : memref<4x8x128xf32, #tpu.memory_space<vmem>>, vector<1x8x128xf32>
    %3 = vector.shape_cast %2 : vector<1x8x128xf32> to vector<8x128xf32>
    %c1 = arith.constant 1 : index
    %c0_4 = arith.constant 0 : index
    %c0_5 = arith.constant 0 : index
    %4 = vector.load %arg1[%c1, %c0_4, %c0_5] : memref<4x8x128xf32, #tpu.memory_space<vmem>>, vector<1x8x128xf32>
    %5 = vector.shape_cast %4 : vector<1x8x128xf32> to vector<8x128xf32>
    %6 = arith.maximumf %3, %5 : vector<8x128xf32>
    %c2 = arith.constant 2 : index
    %c0_6 = arith.constant 0 : index
    %c0_7 = arith.constant 0 : index
    %7 = vector.load %arg1[%c2, %c0_6, %c0_7] : memref<4x8x128xf32, #tpu.memory_space<vmem>>, vector<1x8x128xf32>
    %8 = vector.shape_cast %7 : vector<1x8x128xf32> to vector<8x128xf32>
    %9 = arith.maximumf %6, %8 : vector<8x128xf32>
    %c3 = arith.constant 3 : index
    %c0_8 = arith.constant 0 : index
    %c0_9 = arith.constant 0 : index
    %10 = vector.load %arg1[%c3, %c0_8, %c0_9] : memref<4x8x128xf32, #tpu.memory_space<vmem>>, vector<1x8x128xf32>
    %11 = vector.shape_cast %10 : vector<1x8x128xf32> to vector<8x128xf32>
    %12 = arith.maximumf %9, %11 : vector<8x128xf32>
    %cst = arith.constant 0.000000e+00 : f32
    %13 = vector.broadcast %cst : f32 to vector<8x128xf32>
    %c0_10 = arith.constant 0 : index
    %c0_11 = arith.constant 0 : index
    %c0_12 = arith.constant 0 : index
    %14 = vector.load %arg1[%c0_10, %c0_11, %c0_12] : memref<4x8x128xf32, #tpu.memory_space<vmem>>, vector<1x8x128xf32>
    %15 = vector.shape_cast %14 : vector<1x8x128xf32> to vector<8x128xf32>
    %16 = arith.subf %15, %12 : vector<8x128xf32>
    %17 = math.exp %16 : vector<8x128xf32>
    %18 = arith.addf %13, %17 : vector<8x128xf32>
    %c1_13 = arith.constant 1 : index
    %c0_14 = arith.constant 0 : index
    %c0_15 = arith.constant 0 : index
    %19 = vector.load %arg1[%c1_13, %c0_14, %c0_15] : memref<4x8x128xf32, #tpu.memory_space<vmem>>, vector<1x8x128xf32>
    %20 = vector.shape_cast %19 : vector<1x8x128xf32> to vector<8x128xf32>
    %21 = arith.subf %20, %12 : vector<8x128xf32>
    %22 = math.exp %21 : vector<8x128xf32>
    %23 = arith.addf %18, %22 : vector<8x128xf32>
    %c2_16 = arith.constant 2 : index
    %c0_17 = arith.constant 0 : index
    %c0_18 = arith.constant 0 : index
    %24 = vector.load %arg1[%c2_16, %c0_17, %c0_18] : memref<4x8x128xf32, #tpu.memory_space<vmem>>, vector<1x8x128xf32>
    %25 = vector.shape_cast %24 : vector<1x8x128xf32> to vector<8x128xf32>
    %26 = arith.subf %25, %12 : vector<8x128xf32>
    %27 = math.exp %26 : vector<8x128xf32>
    %28 = arith.addf %23, %27 : vector<8x128xf32>
    %c3_19 = arith.constant 3 : index
    %c0_20 = arith.constant 0 : index
    %c0_21 = arith.constant 0 : index
    %29 = vector.load %arg1[%c3_19, %c0_20, %c0_21] : memref<4x8x128xf32, #tpu.memory_space<vmem>>, vector<1x8x128xf32>
    %30 = vector.shape_cast %29 : vector<1x8x128xf32> to vector<8x128xf32>
    %31 = arith.subf %30, %12 : vector<8x128xf32>
    %32 = math.exp %31 : vector<8x128xf32>
    %33 = arith.addf %28, %32 : vector<8x128xf32>
    %c1_22 = arith.constant 1 : index
    %c0_23 = arith.constant 0 : index
    %c0_24 = arith.constant 0 : index
    %34 = vector.load %arg1[%c1_22, %c0_23, %c0_24] : memref<4x8x128xf32, #tpu.memory_space<vmem>>, vector<1x8x128xf32>
    %35 = vector.shape_cast %34 : vector<1x8x128xf32> to vector<8x128xf32>
    %36 = arith.subf %35, %12 : vector<8x128xf32>
    %37 = math.exp %36 : vector<8x128xf32>
    %38 = arith.divf %37, %33 : vector<8x128xf32>
    %39 = arith.mulf %38, %1 : vector<8x128xf32>
    %cst_25 = arith.constant 0.000000e+00 : f32
    %40 = vector.broadcast %cst_25 : f32 to vector<8x128xf32>
    %cst_26 = arith.constant 0.000000e+00 : f32
    %41 = vector.broadcast %cst_26 : f32 to vector<8x128xf32>
    %cst_27 = arith.constant 0.000000e+00 : f32
    %42 = vector.broadcast %cst_27 : f32 to vector<8x128xf32>
    %c1_i32 = arith.constant 1 : i32
    %43 = tpu.dynamic_rotate %39 by %c1_i32 dim 1 : vector<8x128xf32>, i32 -> vector<8x128xf32>
    %44 = arith.addf %40, %43 : vector<8x128xf32>
    %c127_i32 = arith.constant 127 : i32
    %45 = tpu.dynamic_rotate %39 by %c127_i32 dim 1 : vector<8x128xf32>, i32 -> vector<8x128xf32>
    %46 = arith.addf %44, %45 : vector<8x128xf32>
    %c1_i32_28 = arith.constant 1 : i32
    %47 = tpu.dynamic_rotate %1 by %c1_i32_28 dim 1 : vector<8x128xf32>, i32 -> vector<8x128xf32>
    %48 = arith.addf %41, %47 : vector<8x128xf32>
    %c127_i32_29 = arith.constant 127 : i32
    %49 = tpu.dynamic_rotate %1 by %c127_i32_29 dim 1 : vector<8x128xf32>, i32 -> vector<8x128xf32>
    %50 = arith.addf %48, %49 : vector<8x128xf32>
    %cst_30 = arith.constant 0.000000e+00 : f32
    %51 = vector.broadcast %cst_30 : f32 to vector<8x128xf32>
    %52 = arith.cmpf ogt, %1, %51 : vector<8x128xf32>
    %cst_31 = arith.constant 1.000000e+00 : f32
    %53 = vector.broadcast %cst_31 : f32 to vector<8x128xf32>
    %54 = arith.select %52, %50, %53 : vector<8x128xi1>, vector<8x128xf32>
    %55 = tpu.reciprocal %54 {approx = true} : vector<8x128xf32> -> vector<8x128xf32>
    %56 = arith.mulf %46, %55 : vector<8x128xf32>
    %57 = arith.subf %39, %56 : vector<8x128xf32>
    %58 = math.absf %57 : vector<8x128xf32>
    %59 = arith.mulf %58, %1 : vector<8x128xf32>
    %60 = arith.addf %42, %59 : vector<8x128xf32>
    %c2_i32 = arith.constant 2 : i32
    %61 = tpu.dynamic_rotate %39 by %c2_i32 dim 1 : vector<8x128xf32>, i32 -> vector<8x128xf32>
    %62 = arith.addf %46, %61 : vector<8x128xf32>
    %c126_i32 = arith.constant 126 : i32
    %63 = tpu.dynamic_rotate %39 by %c126_i32 dim 1 : vector<8x128xf32>, i32 -> vector<8x128xf32>
    %64 = arith.addf %62, %63 : vector<8x128xf32>
    %c2_i32_32 = arith.constant 2 : i32
    %65 = tpu.dynamic_rotate %1 by %c2_i32_32 dim 1 : vector<8x128xf32>, i32 -> vector<8x128xf32>
    %66 = arith.addf %50, %65 : vector<8x128xf32>
    %c126_i32_33 = arith.constant 126 : i32
    %67 = tpu.dynamic_rotate %1 by %c126_i32_33 dim 1 : vector<8x128xf32>, i32 -> vector<8x128xf32>
    %68 = arith.addf %66, %67 : vector<8x128xf32>
    %cst_34 = arith.constant 0.000000e+00 : f32
    %69 = vector.broadcast %cst_34 : f32 to vector<8x128xf32>
    %70 = arith.cmpf ogt, %1, %69 : vector<8x128xf32>
    %cst_35 = arith.constant 1.000000e+00 : f32
    %71 = vector.broadcast %cst_35 : f32 to vector<8x128xf32>
    %72 = arith.select %70, %68, %71 : vector<8x128xi1>, vector<8x128xf32>
    %73 = tpu.reciprocal %72 {approx = true} : vector<8x128xf32> -> vector<8x128xf32>
    %74 = arith.mulf %64, %73 : vector<8x128xf32>
    %75 = arith.subf %39, %74 : vector<8x128xf32>
    %76 = math.absf %75 : vector<8x128xf32>
    %77 = arith.mulf %76, %1 : vector<8x128xf32>
    %78 = arith.addf %60, %77 : vector<8x128xf32>
    %c3_i32 = arith.constant 3 : i32
    %79 = tpu.dynamic_rotate %39 by %c3_i32 dim 1 : vector<8x128xf32>, i32 -> vector<8x128xf32>
    %80 = arith.addf %64, %79 : vector<8x128xf32>
    %c125_i32 = arith.constant 125 : i32
    %81 = tpu.dynamic_rotate %39 by %c125_i32 dim 1 : vector<8x128xf32>, i32 -> vector<8x128xf32>
    %82 = arith.addf %80, %81 : vector<8x128xf32>
    %c3_i32_36 = arith.constant 3 : i32
    %83 = tpu.dynamic_rotate %1 by %c3_i32_36 dim 1 : vector<8x128xf32>, i32 -> vector<8x128xf32>
    %84 = arith.addf %68, %83 : vector<8x128xf32>
    %c125_i32_37 = arith.constant 125 : i32
    %85 = tpu.dynamic_rotate %1 by %c125_i32_37 dim 1 : vector<8x128xf32>, i32 -> vector<8x128xf32>
    %86 = arith.addf %84, %85 : vector<8x128xf32>
    %cst_38 = arith.constant 0.000000e+00 : f32
    %87 = vector.broadcast %cst_38 : f32 to vector<8x128xf32>
    %88 = arith.cmpf ogt, %1, %87 : vector<8x128xf32>
    %cst_39 = arith.constant 1.000000e+00 : f32
    %89 = vector.broadcast %cst_39 : f32 to vector<8x128xf32>
    %90 = arith.select %88, %86, %89 : vector<8x128xi1>, vector<8x128xf32>
    %91 = tpu.reciprocal %90 {approx = true} : vector<8x128xf32> -> vector<8x128xf32>
    %92 = arith.mulf %82, %91 : vector<8x128xf32>
    %93 = arith.subf %39, %92 : vector<8x128xf32>
    %94 = math.absf %93 : vector<8x128xf32>
    %95 = arith.mulf %94, %1 : vector<8x128xf32>
    %96 = arith.addf %78, %95 : vector<8x128xf32>
    %97 = vector.shape_cast %96 : vector<8x128xf32> to vector<1x8x128xf32>
    %cst_40 = arith.constant dense<0.000000e+00> : vector<1xf32>
    %98 = vector.multi_reduction <add>, %97, %cst_40 [1, 2] : vector<1x8x128xf32> to vector<1xf32>
    %99 = vector.shape_cast %98 : vector<1xf32> to vector<1x1x1xf32>
    %100 = vector.extract %99[0, 0, 0] : f32 from vector<1x1x1xf32>
    %101 = vector.broadcast %100 : f32 to vector<1x1xf32>
    %102 = vector.shape_cast %1 : vector<8x128xf32> to vector<1x8x128xf32>
    %cst_41 = arith.constant dense<0.000000e+00> : vector<1xf32>
    %103 = vector.multi_reduction <add>, %102, %cst_41 [1, 2] : vector<1x8x128xf32> to vector<1xf32>
    %104 = vector.shape_cast %103 : vector<1xf32> to vector<1x1x1xf32>
    %105 = vector.extract %104[0, 0, 0] : f32 from vector<1x1x1xf32>
    %106 = vector.broadcast %105 : f32 to vector<1x1xf32>
    %107 = vector.shape_cast %101 : vector<1x1xf32> to vector<1x1x1xf32>
    %108 = vector.shape_cast %107 : vector<1x1x1xf32> to vector<1x1x1xf32>
    %109 = vector.broadcast %108 : vector<1x1x1xf32> to vector<1x8x128xf32>
    %c0_42 = arith.constant 0 : index
    %c0_43 = arith.constant 0 : index
    %c0_44 = arith.constant 0 : index
    %110 = vector.load %arg3[%c0_42, %c0_43, %c0_44] : memref<1x8x128xf32, #tpu.memory_space<vmem>>, vector<1x8x128xf32>
    tpu.vector_store %arg3[%c0_42, %c0_43, %c0_44], %109 {strides = array<i32>} : memref<1x8x128xf32, #tpu.memory_space<vmem>>, vector<1x8x128xf32>,
    %111 = vector.shape_cast %106 : vector<1x1xf32> to vector<1x1x1xf32>
    %112 = vector.shape_cast %111 : vector<1x1x1xf32> to vector<1x1x1xf32>
    %113 = vector.broadcast %112 : vector<1x1x1xf32> to vector<1x8x128xf32>
    %c0_45 = arith.constant 0 : index
    %c0_46 = arith.constant 0 : index
    %c0_47 = arith.constant 0 : index
    %114 = vector.load %arg4[%c0_45, %c0_46, %c0_47] : memref<1x8x128xf32, #tpu.memory_space<vmem>>, vector<1x8x128xf32>
    tpu.vector_store %arg4[%c0_45, %c0_46, %c0_47], %113 {strides = array<i32>} : memref<1x8x128xf32, #tpu.memory_space<vmem>>, vector<1x8x128xf32>,
    return
  }
  func.func @transform_0(%arg0: i32) -> (i32, i32, i32) {
    %c0_i32 = arith.constant 0 : i32
    %c0_i32_0 = arith.constant 0 : i32
    %c0_i32_1 = arith.constant 0 : i32
    return %c0_i32, %arg0, %c0_i32_0 : i32, i32, i32
  }
  func.func @transform_1(%arg0: i32) -> (i32, i32) {
    %c0_i32 = arith.constant 0 : i32
    %c0_i32_0 = arith.constant 0 : i32
    return %arg0, %c0_i32 : i32, i32
  }
  func.func @transform_2(%arg0: i32) -> (i32, i32, i32) {
    %c0_i32 = arith.constant 0 : i32
    %c0_i32_0 = arith.constant 0 : i32
    %c0_i32_1 = arith.constant 0 : i32
    return %arg0, %c0_i32, %c0_i32_0 : i32, i32, i32
  }
  func.func @transform_3(%arg0: i32) -> (i32, i32, i32) {
    %c0_i32 = arith.constant 0 : i32
    %c0_i32_0 = arith.constant 0 : i32
    %c0_i32_1 = arith.constant 0 : i32
    return %arg0, %c0_i32, %c0_i32_0 : i32, i32, i32
  }
}

</mosaic_0001>

<bundles_post_ra>
// kernel: tpu_custom_call.1
= control target key start
LH: loop header
LB: loop body
LE: loop exit
PB: predicated region body
PF: predicated region fallthrough
CT: control target
= control target key end

     0   :  { %9 = vsyncpa [#allocation3], 0  ;;  %s406_s0 = inlined_call_operand.hbm [shape: f32[4,8,128], index: 0, kind: input, shape index: {}]   ;;  %s407_s1 = inlined_call_operand.hbm [shape: s8[8,128], index: 1, kind: input, shape index: {}]   ;;  %s408_s2 = inlined_call_operand.hbm [shape: f32[1,8,128], index: 2, kind: output, shape index: {0}]   ;;  %s409_s3 = inlined_call_operand.hbm [shape: f32[1,8,128], index: 3, kind: output, shape index: {1}]  }
   0x1   :  { %10 = vsyncpa [#allocation6], 0 }
   0x2   :  { %11 = vsyncpa [#allocation4], 0 }
   0x3   :  { %12 = vsyncpa [#allocation9], 0  ;;  %s17_s14 = sshll.u32 %s406_s0, 4  ;;  %s340_s15 = smov [#allocation2]   ;;  %s18_s14 = int_to_ptr.hbm [resolvable:$true] %s17_s14 }
   0x4   :  { %s19_s16 = sshll.u32 %s340_s15, 4  ;;  %s31_s19 = sshll.u32 %s407_s1, 4  ;;  %s20_s16 = int_to_ptr.vmem [resolvable:$true] %s19_s16  ;;  %s32_s19 = int_to_ptr.hbm [resolvable:$true] %s31_s19 }
   0x5   :  { %s341_s20 = smov 128   ;;  %s342_s21 = smov 8  }
   0x6   :  { %25 = dma.hbm_to_vmem [thread:$0]  %s18_s14, 512, %s20_s16, [#allocation3], %s341_s20, %s341_s20, %s342_s21  }
   0x7   :  { %s343_s22 = smov [#allocation5]  }
   0x8   :  { %s33_s23 = sshll.u32 %s343_s22, 4  ;;  %s34_s23 = int_to_ptr.vmem [resolvable:$true] %s33_s23 }
   0x9   :  { %36 = dma.hbm_to_vmem [thread:$0]  %s32_s19, 32, %s34_s23, [#allocation6]  }
   0xa   :  { %332 = dma.done.wait [#allocation3], 512  }
   0xb   :  { %333 = vsyncadd [#allocation3], 4294966784 }
   0xc   :  { %334 = dma.done.wait [#allocation6], 32  }
   0xd   :  { %335 = vsyncadd [#allocation6], 4294967264  ;;  %v45_v0 = vld [vmem:[#allocation5] sm:$0x3]  ;;  %v50_v2 = vld [vmem:[#allocation2 + $0x8] sm:$0xff]  ;;  %s344_s0 = smov 2  }
   0xe   :  { %v48_v1 = vld [vmem:[#allocation2] sm:$0xff]  ;;  %v46_v3 = vunpack.c.0.s8 %v45_v0  ;;  %v53_v5 = vld [vmem:[#allocation2 + $0x10] sm:$0xff]  ;;  %v56_v6 = vld [vmem:[#allocation2 + $0x18] sm:$0xff]  ;;  %s345_s1 = smov 1   ;;  %s346_s24 = smov 3  }
   0xf   :  { %v51_v4 = vmax.f32 %v48_v1, %v50_v2  ;;  %s347_s25 = smov 126   ;;  %s348_s26 = smov 127  }
  0x10   :  { %v378_v7 = vcvt.s32.f32 %v46_v3  ;;  %s349_s27 = smov 125   ;;  %s350_s28 = smov [#allocation7]  }
  0x11   :  { %v54_v8 = vmax.f32 %v51_v4, %v53_v5  ;;  %s175_s29 = sshll.u32 %s350_s28, 4  ;;  %s177_s5 = sshll.u32 %s408_s2, 4  ;;  %s176_s29 = int_to_ptr.vmem [resolvable:$true] %s175_s29  ;;  %s178_s5 = int_to_ptr.hbm [resolvable:$true] %s177_s5 }
  0x12   :  { %116 = vrot.lane.b32.xlu1 %v378_v7, %s344_s0  ;;  %96 = vrot.lane.b32.xlu0 %v378_v7, %s345_s1  ;;  %vm102_vm4 = vcmp.gt.f32.partialorder %v378_v7, 0.0  ;;  %s351_s6 = smov [#allocation8]   ;;  %s188_s10 = sshll.u32 %s409_s3, 4  ;;  %s189_s10 = int_to_ptr.hbm [resolvable:$true] %s188_s10 }
  0x13   :  { %v57_v9 = vmax.f32 %v54_v8, %v56_v6  ;;  %135 = vrot.lane.b32.xlu2 %v378_v7, %s346_s24  ;;  %s186_s7 = sshll.u32 %s351_s6, 4  ;;  %s187_s7 = int_to_ptr.vmem [resolvable:$true] %s186_s7 }
  0x15   :  { %v58_v10 = vsub.f32 %v48_v1, %v57_v9  ;;  %v62_v11 = vsub.f32 %v50_v2, %v57_v9  ;;  %v66_v12 = vsub.f32 %v53_v5, %v57_v9  ;;  %v70_v13 = vsub.f32 %v56_v6, %v57_v9 }
  0x17   :  { %v59_v14 = vmul.f32 1.442695, %v58_v10  ;;  %v63_v15 = vmul.f32 1.442695, %v62_v11  ;;  %v67_v16 = vmul.f32 1.442695, %v66_v12 }
  0x18   :  { %v71_v17 = vmul.f32 1.442695, %v70_v13 }
  0x19   :  { %220 = vpow2.f32 %v59_v14 }
  0x1a   :  { %222 = vpow2.f32 %v63_v15  ;;  %119 = vrot.lane.b32.xlu1 %v378_v7, %s347_s25  ;;  %99 = vrot.lane.b32.xlu0 %v378_v7, %s348_s26 }
  0x1b   :  { %224 = vpow2.f32 %v67_v16 }
  0x1c   :  { %226 = vpow2.f32 %v71_v17 }
  0x1f   :  { %v221_v18 = vpop.eup %220 }
  0x20   :  { %v223_v19 = vpop.eup %222 }
  0x21   :  { %v225_v20 = vpop.eup %224  ;;  %v65_v21 = vadd.f32 %v223_v19, %v221_v18 }
  0x22   :  { %v227_v22 = vpop.eup %226  ;;  %138 = vrot.lane.b32.xlu1 %v378_v7, %s349_s27 }
  0x23   :  { %v69_v23 = vadd.f32 %v225_v20, %v65_v21 }
  0x25   :  { %v73_v24 = vadd.f32 %v227_v22, %v69_v23 }
  0x27   :  { %228 = vrcp.f32 %v73_v24  ;;  %v85_v27 = vand.u32 2147483648, %v73_v24  ;;  %vm79_vm0 = vweird.f32 %v73_v24  ;;  %v83_v29 = vand.u32 2147483647, %v73_v24 }
  0x29   :  { %v86_v31 = vor.u32 1.1754944e-38, %v85_v27  ;;  %vm84_vm3 = vcmp.eq.f32.partialorder %v83_v29, 8.507059e+37 }
  0x2d   :  { %v229_v25 = vpop.eup %228 }
  0x2e   :  { %v75_v26 = vmul.f32 %v229_v25, %v73_v24  ;;  %vm80_vm1 = vweird.f32 %v229_v25 }
  0x2f   :  { %vm81_vm2 = vmor %vm79_vm0, %vm80_vm1 }
  0x30   :  { %v76_v28 = vsub.f32 1.0, %v75_v26 }
  0x32   :  { %v77_v30 = vmul.f32 %v229_v25, %v76_v28 }
  0x34   :  { %v78_v32 = vadd.f32 %v229_v25, %v77_v30 }
  0x36   :  { %v82_v33 = vsel %vm81_vm2, %v229_v25, %v78_v32 }
  0x37   :  { %v87_v34 = vsel %vm84_vm3, %v86_v31, %v82_v33 }
  0x38   :  { %v88_v35 = vmul.f32 %v223_v19, %v87_v34 }
  0x3a   :  { %v89_v36 = vmul.f32 %v88_v35, %v378_v7 }
  0x3c   :  { %93 = vrot.lane.b32.xlu0 %v89_v36, %s348_s26  ;;  %129 = vrot.lane.b32.xlu1 %v89_v36, %s346_s24 }
  0x3d   :  { %90 = vrot.lane.b32.xlu2 %v89_v36, %s345_s1 }
  0x44   :  { %113 = vrot.lane.b32.xlu0 %v89_v36, %s347_s25 }
  0x45   :  { %110 = vrot.lane.b32.xlu2 %v89_v36, %s344_s0 }
  0x4d   :  { %132 = vrot.lane.b32.xlu2 %v89_v36, %s349_s27 }
  0x66   :  { %157 = vadd.xlane.f32.xlu1 %v378_v7 }
  0x6d   :  { %v136_v40 = vpop.permute.xlu2 %135 }
  0x84   :  { %v97_v37 = vpop.permute.xlu0 %96  ;;  %v117_v38 = vpop.permute.xlu1 %116 }
  0x8c   :  { %v100_v39 = vpop.permute.xlu0 %99  ;;  %v120_v42 = vpop.permute.xlu1 %119 }
  0x8d   :  { %v101_v41 = vadd.f32 %v100_v39, %v97_v37 }
  0x8f   :  { %v118_v43 = vadd.f32 %v117_v38, %v101_v41  ;;  %v103_v46 = vsel %vm102_vm4, %v101_v41, 1.0 }
  0x90   :  { %230 = vrcp.f32 %v103_v46 }
  0x91   :  { %v121_v45 = vadd.f32 %v120_v42, %v118_v43 }
  0x93   :  { %v137_v47 = vadd.f32 %v136_v40, %v121_v45  ;;  %v122_v50 = vsel %vm102_vm4, %v121_v45, 1.0 }
  0x94   :  { %v139_v48 = vpop.permute.xlu1 %138  ;;  %232 = vrcp.f32 %v122_v50 }
  0x95   :  { %v140_v51 = vadd.f32 %v139_v48, %v137_v47 }
  0x96   :  { %v231_v55 = vpop.eup %230 }
  0x97   :  { %v91_v44 = vpop.permute.xlu2 %90  ;;  %v141_v54 = vsel %vm102_vm4, %v140_v51, 1.0 }
  0x98   :  { %234 = vrcp.f32 %v141_v54 }
  0x9a   :  { %v233_v61 = vpop.eup %232 }
  0x9e   :  { %v235_v4 = vpop.eup %234 }
  0x9f   :  { %v111_v52 = vpop.permute.xlu2 %110 }
  0xa7   :  { %v133_v62 = vpop.permute.xlu2 %132 }
  0xae   :  { %v94_v49 = vpop.permute.xlu0 %93  ;;  %v130_v59 = vpop.permute.xlu1 %129 }
  0xaf   :  { %v95_v53 = vadd.f32 %v94_v49, %v91_v44 }
  0xb1   :  { %v105_v56 = vmul.f32 %v231_v55, %v95_v53  ;;  %v112_v57 = vadd.f32 %v111_v52, %v95_v53 }
  0xb3   :  { %v106_v63 = vsub.f32 %v89_v36, %v105_v56 }
  0xb5   :  { %v107_v5 = vand.u32 2147483647, %v106_v63 }
  0xb6   :  { %v114_v58 = vpop.permute.xlu0 %113 }
  0xb7   :  { %v115_v60 = vadd.f32 %v114_v58, %v112_v57  ;;  %v108_v12 = vmul.f32 %v107_v5, %v378_v7 }
  0xb9   :  { %v124_v0 = vmul.f32 %v233_v61, %v115_v60  ;;  %v131_v1 = vadd.f32 %v130_v59, %v115_v60 }
  0xbb   :  { %v125_v2 = vsub.f32 %v89_v36, %v124_v0  ;;  %v134_v3 = vadd.f32 %v133_v62, %v131_v1 }
  0xbd   :  { %v126_v6 = vand.u32 2147483647, %v125_v2  ;;  %v143_v8 = vmul.f32 %v235_v4, %v134_v3 }
  0xbf   :  { %v144_v9 = vsub.f32 %v89_v36, %v143_v8  ;;  %v127_v10 = vmul.f32 %v126_v6, %v378_v7 }
  0xc1   :  { %v145_v11 = vand.u32 2147483647, %v144_v9  ;;  %v128_v13 = vadd.f32 %v127_v10, %v108_v12 }
  0xc3   :  { %v146_v14 = vmul.f32 %v145_v11, %v378_v7 }
  0xc5   :  { %v147_v15 = vadd.f32 %v146_v14, %v128_v13 }
  0xc7   :  { %148 = vadd.xlane.f32.xlu0 %v147_v15 }
  0xd9   :  { %v158_v16 = vpop.xlane.xlu1 %157 }
  0xda   :  { %v159_v17 = vrot.slane %v158_v16, 4 }
  0xdc   :  { %v160_v18 = vadd.f32 %v159_v17, %v158_v16 }
  0xde   :  { %v161_v19 = vrot.slane %v160_v18, 2 }
  0xe0   :  { %v162_v23 = vadd.f32 %v161_v19, %v160_v18 }
  0xe2   :  { %v163_v26 = vrot.slane %v162_v23, 1 }
  0xe4   :  { %v164_v29 = vadd.f32 %v163_v26, %v162_v23 }
 0x13a   :  { %v149_v20 = vpop.xlane.xlu0 %148 }
 0x13b   :  { %v150_v21 = vrot.slane %v149_v20, 4 }
 0x13d   :  { %v151_v22 = vadd.f32 %v150_v21, %v149_v20 }
 0x13f   :  { %v152_v24 = vrot.slane %v151_v22, 2 }
 0x141   :  { %v153_v25 = vadd.f32 %v152_v24, %v151_v22 }
 0x143   :  { %v154_v27 = vrot.slane %v153_v25, 1 }
 0x145   :  { %v155_v28 = vadd.f32 %v154_v27, %v153_v25 }
 0x147   :  { %204 = vpush %v155_v28 }
 0x148   :  { %206 = vpush %v164_v29 }
 0x178   :  { %s205_s11 = spop %204 }
 0x179   :  { %v166_v7 = vstv %s205_s11  ;;  %s207_s12 = spop %206 }
 0x17a   :  { %167 = vst [vmem:[#allocation7] sm:$0xff] %v166_v7  ;;  %v168_v30 = vstv %s207_s12 }
 0x17b   :  { %169 = vst [vmem:[#allocation8] sm:$0xff] %v168_v30  ;;  %180 = dma.vmem_to_hbm [thread:$0]  %s176_s29, 128, %s178_s5, [#allocation4]  }
 0x17c   :  { %191 = dma.vmem_to_hbm [thread:$0]  %s187_s7, 128, %s189_s10, [#allocation9]  }
 0x17d   :  { %336 = dma.done.wait [#allocation4], 128  }
 0x17e   :  { %337 = vsyncadd [#allocation4], 4294967168 }
 0x17f   :  { %338 = dma.done.wait [#allocation9], 128  }
 0x180   :  { %339 = vsyncadd [#allocation9], 4294967168 }
 0x181   :  { %200 = vsyncpa [#allocation3], 1 }
 0x182   :  { %201 = vsyncpa [#allocation6], 1 }
 0x183   :  { %202 = vsyncpa [#allocation4], 1 }
 0x184   :  { %203 = vsyncpa [#allocation9], 1 }

</bundles_post_ra>
